<compile_context>
chip_gen: v6e
topology: v6e:2x2x1
jax: 0.10.0
libtpu: 0.0.40
codegen_flags: <defaults>
</compile_context>

<pallas_src>
import math

import jax
import jax.numpy as jnp
from jax.experimental import pallas as pl
from jax.experimental.pallas import tpu as pltpu  # noqa: F401 (TPU backend)

# ----------------------------- configuration -----------------------------
B = 2                    # batch
IMG_C = 3                # RGB input channels
SEARCH_SZ = 32           # search image H = W
TEMPLATE_SZ = 16         # template image H = W
BACKBONE_STRIDE = 4      # synthetic backbone stride
NUM_CHANNELS = 8         # backbone.num_channels (input to the bottleneck)
HIDDEN = 32              # transformer.d_model
NUM_QUERIES = 1          # STARK-S uses a single object query
FEAT_SZ_S = SEARCH_SZ // BACKBONE_STRIDE          # box_head.feat_sz  (= 8)
FEAT_LEN_S = FEAT_SZ_S * FEAT_SZ_S                # self.feat_len_s   (= 64)
FEAT_SZ_T = TEMPLATE_SZ // BACKBONE_STRIDE        # template feat size (= 4)
FEAT_LEN_T = FEAT_SZ_T * FEAT_SZ_T                # template tokens    (= 16)
OUT_LANES = 128          # lane-dense packed output width

assert NUM_QUERIES == 1  # the Nq=1 VPU fast path below relies on this


# =========================== Pallas kernels ===============================
def _backbone_kernel(tok_ref, w_ref, b_ref, o_ref):
    """Folded backbone-projection + bottleneck 1x1 conv (one linear layer).

    Used only for the one-time TEMPLATE precompute.  The K = IMG_C = 3
    contraction is done as 3 VPU FMAs (lane/sublane-dense) instead of pushing
    a 3-lane-wide operand through the MXU.

    tok: (T, IMG_C)  channel-last pixel tokens
    w:   (IMG_C, HIDDEN) folded weight,  b: (1, HIDDEN) folded bias
    o:   (T, HIDDEN)
    """
    x = tok_ref[...]
    w = w_ref[...]
    h = x[:, 0:1] * w[0:1, :]
    for c in range(1, IMG_C):
        h = h + x[:, c:c + 1] * w[c:c + 1, :]
    o_ref[...] = h + b_ref[...]


def _stark_fused_kernel(tok_s_ref, bw_ref, bb_ref, feat_t_ref,
                        mask_ref, pos_ref, ew_ref, eb_ref, q_ref,
                        wtl_ref, wbr_ref, gx_ref, gy_ref, out_ref):
    """Whole per-frame STARK-S forward in ONE single-block kernel.

    tok_s: (B*HW_s, IMG_C) pooled search-image tokens (channel-last)
    bw/bb: folded backbone+bottleneck weight (IMG_C, C) / bias (1, C)
    feat_t: (B, S_t, C)  precomputed template features
    mask:  (B, S) float, 1.0 = padded token   (S = S_t + HW_s)
    pos:   (B, S, C) sine positional embedding (template + search)
    ew/eb: encoder projection weight (C, C) / bias (1, C)
    q:     (Nq, C) object query embedding (Nq = 1)
    wtl/wbr: (1, C) corner-score 1x1-conv weights (bias cancels in the spatial
             softmax of the soft-argmax, so it is dropped)
    gx/gy: (1, HW_s) normalized coordinate grids
    out:   (B, OUT_LANES) packed: embed in lanes [0,C), box (cxcywh) in [C,C+4)
    """
    f32 = jnp.float32
    Bn, S_t, C = feat_t_ref.shape

    # ---- backbone (folded 1x1 proj + bottleneck): K=3 VPU contraction ----
    x = tok_s_ref[...]                              # (B*HW_s, IMG_C)
    bw = bw_ref[...]                                # (IMG_C, C)
    h = x[:, 0:1] * bw[0:1, :]
    for c in range(1, IMG_C):
        h = h + x[:, c:c + 1] * bw[c:c + 1, :]
    feat_s = (h + bb_ref[...]).reshape(Bn, FEAT_LEN_S, C)

    # ---- template/search concat stays in VMEM (no HBM round trip) ----
    feat = jnp.concatenate([feat_t_ref[...], feat_s], axis=1)   # (B, S, C)
    pos = pos_ref[...]
    mask = mask_ref[...]                                        # (B, S)
    S = S_t + FEAT_LEN_S

    # ---- encoder: residual token projection, ONE flat f32 GEMM ----
    tok = (feat + pos).reshape(Bn * S, C)
    proj = jnp.dot(tok, ew_ref[...], preferred_element_type=f32) + eb_ref[...]
    enc_mem = feat + proj.reshape(Bn, S, C)                     # (B, S, C)

    # ---- decoder: masked single-head cross-attention, Nq = 1 (VPU) ----
    q = q_ref[...]                                              # (1, C)
    k = enc_mem + pos
    scale = 1.0 / math.sqrt(C)
    scores = jnp.sum(k * q[None, :, :], axis=-1) * scale        # (B, S)
    # key_padding_mask; with max-subtraction a fully padded row degrades to a
    # uniform distribution rather than NaN.
    scores = scores + mask * (-1e9)
    scores = scores - jnp.max(scores, axis=-1, keepdims=True)
    p = jnp.exp(scores)
    p = p * pl.reciprocal(jnp.sum(p, axis=-1, keepdims=True), approx=True)
    dec = jnp.sum(p[:, :, None] * enc_mem, axis=1)              # (B, C)

    # ---- CORNER box head: correlation + corner scores + soft-argmax ----
    enc_opt = enc_mem[:, S - FEAT_LEN_S:, :]                    # (B, HW_s, C)
    att = jnp.sum(enc_opt * dec[:, None, :], axis=-1)           # (B, HW_s)
    # 1x1-conv corner scorer: channel contraction done analytically so the
    # (B, Nq, C, HW) `opt` tensor of the reference is never materialized.
    e_tl = jnp.sum(enc_opt * wtl_ref[...][None, :, :], axis=-1)  # (B, HW_s)
    e_br = jnp.sum(enc_opt * wbr_ref[...][None, :, :], axis=-1)
    s_tl = e_tl * att
    s_br = e_br * att
    gx = gx_ref[...]                                            # (1, HW_s)
    gy = gy_ref[...]

    def soft_argmax(s):                                         # s: (B, HW_s)
        s = s - jnp.max(s, axis=-1, keepdims=True)
        e = jnp.exp(s)
        inv = pl.reciprocal(jnp.sum(e, axis=-1, keepdims=True), approx=True)
        xc = jnp.sum(e * gx, axis=-1, keepdims=True) * inv      # (B, 1)
        yc = jnp.sum(e * gy, axis=-1, keepdims=True) * inv
        return xc, yc

    xtl, ytl = soft_argmax(s_tl)
    xbr, ybr = soft_argmax(s_br)
    # box_xyxy_to_cxcywh
    cx = 0.5 * (xtl + xbr)
    cy = 0.5 * (ytl + ybr)
    w = xbr - xtl
    hb = ybr - ytl
    box = jnp.concatenate([cx, cy, w, hb], axis=-1)             # (B, 4)

    # ---- one lane-dense packed store ----
    pad = jnp.zeros((Bn, OUT_LANES - C - 4), f32)
    out_ref[...] = jnp.concatenate([dec, box, pad], axis=-1)    # (B, 128)


# ============================ module glue =================================
def position_embedding_sine(mask_ds, num_pos_feats):
    """DETR-style sine positional embedding, emitted channel-last (B,HW,C).
    Mask-only function: evaluated once at setup, never in the per-frame path."""
    Bn, Hf, Wf = mask_ds.shape
    not_mask = 1.0 - mask_ds.astype(jnp.float32)
    y_embed = jnp.cumsum(not_mask, axis=1)
    x_embed = jnp.cumsum(not_mask, axis=2)
    eps = 1e-6
    scale = 2.0 * math.pi
    y_embed = y_embed / (y_embed[:, -1:, :] + eps) * scale
    x_embed = x_embed / (x_embed[:, :, -1:] + eps) * scale
    dim_t = jnp.arange(num_pos_feats, dtype=jnp.float32)
    dim_t = 10000.0 ** (2.0 * jnp.floor(dim_t / 2.0) / num_pos_feats)
    pos_x = x_embed[:, :, :, None] / dim_t
    pos_y = y_embed[:, :, :, None] / dim_t
    pos_x = jnp.stack([jnp.sin(pos_x[:, :, :, 0::2]),
                       jnp.cos(pos_x[:, :, :, 1::2])], axis=4)
    pos_x = pos_x.reshape(Bn, Hf, Wf, -1)
    pos_y = jnp.stack([jnp.sin(pos_y[:, :, :, 0::2]),
                       jnp.cos(pos_y[:, :, :, 1::2])], axis=4)
    pos_y = pos_y.reshape(Bn, Hf, Wf, -1)
    pos = jnp.concatenate([pos_y, pos_x], axis=3)               # (B,Hf,Wf,C)
    return pos.reshape(Bn, Hf * Wf, 2 * num_pos_feats)          # (B, HW, C)


def pool_tokens(img):
    """Synthetic backbone stem: 4x4 average pool + NCHW->token layout.
    # TODO(synk): the real backbone is an injected ResNet; this pooling is a
    # synthetic stand-in and its tiny reshape/transpose stays in XLA glue."""
    Bn, Cin, H, W = img.shape
    Hf, Wf = H // BACKBONE_STRIDE, W // BACKBONE_STRIDE
    pooled = img.reshape(Bn, Cin, Hf, BACKBONE_STRIDE,
                         Wf, BACKBONE_STRIDE).mean(axis=(3, 5))
    tokens = pooled.transpose(0, 2, 3, 1).reshape(Bn * Hf * Wf, Cin)
    return tokens, Hf, Wf


def forward_backbone(img, mask, params):
    """STARKS.forward_backbone + adjust with the (folded) backbone projection
    and bottleneck done in one single-block Pallas call.  Used once for the
    TEMPLATE branch; the per-frame search branch is fused into the main
    kernel instead."""
    Bn = img.shape[0]
    tokens, Hf, Wf = pool_tokens(img)
    feat = pl.pallas_call(
        _backbone_kernel,
        out_shape=jax.ShapeDtypeStruct((tokens.shape[0], HIDDEN), jnp.float32),
    )(tokens, params["bw_fold"], params["bb_fold"])
    feat_vec = feat.reshape(Bn, Hf * Wf, HIDDEN)                # (B, HW, C)
    mask_ds = mask[:, ::BACKBONE_STRIDE, ::BACKBONE_STRIDE]
    assert mask_ds is not None
    mask_vec = mask_ds.reshape(Bn, Hf * Wf).astype(jnp.float32)  # (B, HW)
    pos_vec = position_embedding_sine(mask_ds, HIDDEN // 2)      # (B, HW, C)
    return feat_vec, mask_vec, pos_vec


def precompute_search_meta(mask, template):
    """One-time setup: downsample the (fixed) search padding mask, build its
    sine positional embedding, and pre-concatenate template+search mask/pos.
    Everything here depends only on the mask pattern, not the image, so it is
    hoisted out of the per-frame path (same math as the original)."""
    Bn = mask.shape[0]
    mask_ds = mask[:, ::BACKBONE_STRIDE, ::BACKBONE_STRIDE]
    mask_vec = mask_ds.reshape(Bn, -1).astype(jnp.float32)       # (B, HW_s)
    pos_vec = position_embedding_sine(mask_ds, HIDDEN // 2)      # (B, HW_s, C)
    feat_t, mask_t, pos_t = template
    mask_full = jnp.concatenate([mask_t, mask_vec], axis=1)      # (B, S)
    pos_full = jnp.concatenate([pos_t, pos_vec], axis=1)         # (B, S, C)
    return feat_t, mask_full, pos_full


def stark_s_forward(img, search_meta, params):
    """STARKS.forward(img, mask, template): the entire per-frame path is ONE
    single-block Pallas call; only the tiny 4x4 pooling of the raw image and
    the output slicing live outside it.
    # TODO(synk): the real transformer is an injected 6-layer enc/dec module
    # and the real box_head is a multi-layer Corner_Predictor conv tower;
    # 1-layer residual encoder + single-head masked decoder + 1x1-conv corner
    # scorer are synthetic stand-ins.
    """
    feat_t, mask_full, pos_full = search_meta
    Bn = feat_t.shape[0]
    tokens, _, _ = pool_tokens(img)                              # (B*HW_s, 3)

    packed = pl.pallas_call(
        _stark_fused_kernel,
        out_shape=jax.ShapeDtypeStruct((Bn, OUT_LANES), jnp.float32),
    )(tokens, params["bw_fold"], params["bb_fold"], feat_t,
      mask_full, pos_full, params["enc_w"], params["enc_b"],
      params["query_embed"], params["w_tl"], params["w_br"],
      params["grid_x"], params["grid_y"])

    embed = packed[:, :HIDDEN]                                   # (B, C)
    boxes = packed[:, HIDDEN:HIDDEN + 4]                         # (B, 4)
    outputs_coord = boxes[:, None, :]                            # (B, Nq, 4)
    output_embed = embed[None, :, None, :]                       # (1,B,Nq,C)
    out = {"pred_boxes": outputs_coord}
    return out, outputs_coord, output_embed


# ============================ parameters ==================================
def init_params():
    keys = jax.random.split(jax.random.PRNGKey(42), 6)

    def init(k, shape, scale):
        return (scale * jax.random.normal(k, shape)).astype(jnp.float32)

    backbone_w = init(keys[0], (IMG_C, NUM_CHANNELS), 0.5)
    backbone_b = jnp.zeros((1, NUM_CHANNELS), jnp.float32)
    bottleneck_w = init(keys[1], (NUM_CHANNELS, HIDDEN),
                        1.0 / math.sqrt(NUM_CHANNELS))
    bottleneck_b = jnp.zeros((1, HIDDEN), jnp.float32)

    params = {
        # Fold backbone projection + bottleneck into ONE linear layer on the
        # host: identical math (no nonlinearity in between), half the GEMMs.
        "bw_fold": backbone_w @ bottleneck_w,                    # (3, HIDDEN)
        "bb_fold": backbone_b @ bottleneck_w + bottleneck_b,     # (1, HIDDEN)
        "enc_w": init(keys[2], (HIDDEN, HIDDEN), 1.0 / math.sqrt(HIDDEN)),
        "enc_b": jnp.zeros((1, HIDDEN), jnp.float32),
        "query_embed": init(keys[3], (NUM_QUERIES, HIDDEN), 1.0),
        "w_tl": init(keys[4], (1, HIDDEN), 1.0 / math.sqrt(HIDDEN)),
        "w_br": init(keys[5], (1, HIDDEN), 1.0 / math.sqrt(HIDDEN)),
    }
    # STARK Corner_Predictor convention: coord = (idx * stride) / img_sz
    # = idx / feat_sz (no +0.5 half-pixel offset).
    idx = jnp.arange(FEAT_LEN_S, dtype=jnp.float32)
    params["grid_x"] = ((idx % FEAT_SZ_S) / FEAT_SZ_S)[None, :]  # (1, HW_s)
    params["grid_y"] = (jnp.floor(idx / FEAT_SZ_S) / FEAT_SZ_S)[None, :]
    return params


# =============================== main =====================================
if __name__ == "__main__":
    params = init_params()

    key = jax.random.PRNGKey(0)
    k1, k2 = jax.random.split(key)
    img = jax.random.normal(k1, (B, IMG_C, SEARCH_SZ, SEARCH_SZ),
                            dtype=jnp.float32)
    timg = jax.random.normal(k2, (B, IMG_C, TEMPLATE_SZ, TEMPLATE_SZ),
                             dtype=jnp.float32)
    # padding masks (True = padded pixel): pad the right quarter of each image
    mask = jnp.zeros((B, SEARCH_SZ, SEARCH_SZ), dtype=bool)
    mask = mask.at[:, :, -SEARCH_SZ // 4:].set(True)
    tmask = jnp.zeros((B, TEMPLATE_SZ, TEMPLATE_SZ), dtype=bool)
    tmask = tmask.at[:, :, -TEMPLATE_SZ // 4:].set(True)

    # One-time setup (as in STARK inference): template features via the
    # backbone, plus mask-dependent positional embeddings for the fixed
    # search region — all hoisted out of the per-frame path.
    template = jax.jit(forward_backbone)(timg, tmask, params)
    jax.block_until_ready(template)
    search_meta = jax.jit(precompute_search_meta)(mask, template)
    jax.block_until_ready(search_meta)

    forward_fn = jax.jit(stark_s_forward)
    out, outputs_coord, output_embed = forward_fn(img, search_meta, params)
    jax.block_until_ready(outputs_coord)
    jax.block_until_ready(output_embed)

    assert out["pred_boxes"].shape == (B, NUM_QUERIES, 4)
    assert outputs_coord.shape == (B, NUM_QUERIES, 4)
    assert output_embed.shape == (1, B, NUM_QUERIES, HIDDEN)
    assert bool(jnp.all(jnp.isfinite(outputs_coord)))
    assert bool(jnp.all(jnp.isfinite(output_embed)))
    print("KERNEL_OK")
</pallas_src>

<mosaic_0001>
module attributes {stable_mosaic.version = 11 : i64} {
  func.func @_backbone_kernel(%arg0: memref<32x3xf32, #tpu.memory_space<vmem>>, %arg1: memref<3x32xf32, #tpu.memory_space<vmem>>, %arg2: memref<1x32xf32, #tpu.memory_space<vmem>>, %arg3: memref<32x32xf32, #tpu.memory_space<vmem>>) attributes {dimension_semantics = [], scalar_prefetch = 0 : i64, scratch_operands = 0 : i64, tpu.core_type = #tpu.core_type<tc>} {
    %c0 = arith.constant 0 : index
    %c0_0 = arith.constant 0 : index
    %0 = vector.load %arg0[%c0, %c0_0] : memref<32x3xf32, #tpu.memory_space<vmem>>, vector<32x3xf32>
    %c0_1 = arith.constant 0 : index
    %c0_2 = arith.constant 0 : index
    %1 = vector.load %arg1[%c0_1, %c0_2] : memref<3x32xf32, #tpu.memory_space<vmem>>, vector<3x32xf32>
    %2 = vector.extract_strided_slice %0 {offsets = [0, 0], sizes = [32, 1], strides = [1, 1]} : vector<32x3xf32> to vector<32x1xf32>
    %3 = vector.extract_strided_slice %1 {offsets = [0, 0], sizes = [1, 32], strides = [1, 1]} : vector<3x32xf32> to vector<1x32xf32>
    %4 = vector.broadcast %2 : vector<32x1xf32> to vector<32x32xf32>
    %5 = vector.broadcast %3 : vector<1x32xf32> to vector<32x32xf32>
    %6 = arith.mulf %4, %5 : vector<32x32xf32>
    %7 = vector.extract_strided_slice %0 {offsets = [0, 1], sizes = [32, 1], strides = [1, 1]} : vector<32x3xf32> to vector<32x1xf32>
    %8 = vector.extract_strided_slice %1 {offsets = [1, 0], sizes = [1, 32], strides = [1, 1]} : vector<3x32xf32> to vector<1x32xf32>
    %9 = vector.broadcast %7 : vector<32x1xf32> to vector<32x32xf32>
    %10 = vector.broadcast %8 : vector<1x32xf32> to vector<32x32xf32>
    %11 = arith.mulf %9, %10 : vector<32x32xf32>
    %12 = arith.addf %6, %11 : vector<32x32xf32>
    %13 = vector.extract_strided_slice %0 {offsets = [0, 2], sizes = [32, 1], strides = [1, 1]} : vector<32x3xf32> to vector<32x1xf32>
    %14 = vector.extract_strided_slice %1 {offsets = [2, 0], sizes = [1, 32], strides = [1, 1]} : vector<3x32xf32> to vector<1x32xf32>
    %15 = vector.broadcast %13 : vector<32x1xf32> to vector<32x32xf32>
    %16 = vector.broadcast %14 : vector<1x32xf32> to vector<32x32xf32>
    %17 = arith.mulf %15, %16 : vector<32x32xf32>
    %18 = arith.addf %12, %17 : vector<32x32xf32>
    %c0_3 = arith.constant 0 : index
    %c0_4 = arith.constant 0 : index
    %19 = vector.load %arg2[%c0_3, %c0_4] : memref<1x32xf32, #tpu.memory_space<vmem>>, vector<1x32xf32>
    %20 = vector.broadcast %19 : vector<1x32xf32> to vector<32x32xf32>
    %21 = arith.addf %18, %20 : vector<32x32xf32>
    %c0_5 = arith.constant 0 : index
    %c0_6 = arith.constant 0 : index
    %22 = vector.load %arg3[%c0_5, %c0_6] : memref<32x32xf32, #tpu.memory_space<vmem>>, vector<32x32xf32>
    tpu.vector_store %arg3[%c0_5, %c0_6], %21 {strides = array<i32>} : memref<32x32xf32, #tpu.memory_space<vmem>>, vector<32x32xf32>,
    return
  }
}

</mosaic_0001>

<bundles_post_ra>
// kernel: forward_backbone.1
= control target key start
LH: loop header
LB: loop body
LE: loop exit
PB: predicated region body
PF: predicated region fallthrough
CT: control target
= control target key end

     0   :  { %v171_v2 = vmov 0   ;;  %s222_s0 = inlined_call_operand.vmem [shape: f32[32,3], index: 0, kind: input, shape index: {}]   ;;  %s223_s1 = inlined_call_operand.vmem [shape: f32[3,32], index: 1, kind: input, shape index: {}]   ;;  %s224_s2 = inlined_call_operand.vmem [shape: f32[1,32], index: 2, kind: input, shape index: {}]   ;;  %s225_s3 = inlined_call_operand.hbm [shape: f32[32,32], index: 3, kind: output, shape index: {}]  }
   0x1   :  { %v17_v0 = vld [vmem:[%s222_s0 + $0x10] sm:$0xff]  ;;  %v15_v1 = vld [vmem:[%s222_s0] sm:$0xff]  ;;  %144 = vset.pattern.permute.xlu1 %v171_v2  ;;  %143 = vset.pattern.permute.xlu0 %v171_v2 }
   0x2   :  { %8 = vsyncpa [#allocation3], 0  ;;  %32 = vperm.xlu1 %144, %v17_v0   ;;  %22 = vperm.xlu0 %143, %v15_v1   ;;  %v18_v3 = vld [vmem:[%s222_s0 + $0x18] sm:$0xff]  ;;  %v16_v4 = vld [vmem:[%s222_s0 + $0x8] sm:$0xff]  ;;  %v172_v5 = vmov 1   ;;  %v173_v6 = vmov 2   ;;  %v40_v7 = vlaneseq }
   0x3   :  { %v19_v15 = vld [vmem:[%s223_s1] sm:$0x7]  ;;  %vm115_vm0 = vcmask 261120  }
   0x4   :  { %v41_v10 = vshrl.u32 %v40_v7, 7  ;;  %v136_v35 = vld [vmem:[%s224_s2] ss:$0 sm:$0xff]  ;;  %s174_s2 = smov [#allocation2]  }
   0x5   :  { %s125_s22 = sshll.u32 %s174_s2, 4  ;;  %s126_s22 = int_to_ptr.vmem [resolvable:$true] %s125_s22 }
   0x6   :  { %37 = vperm.xlu1 %144, %v18_v3   ;;  %27 = vperm.xlu0 %143, %v16_v4   ;;  %v66_v13 = vsub.s32 1, %v41_v10  ;;  %v42_v14 = vsub.s32 0, %v41_v10  ;;  %v94_v19 = vsub.s32 2, %v41_v10  ;;  %s149_s23 = scalar_lea.vmem %s126_s22, 512  ;;  %p154_p1 = scmp.lt.s32.totalorder %s126_s22, %s126_s22 }
   0x7   :  { %p150_p0 = scmp.ne.s32.totalorder %s126_s22, %s149_s23  ;;  %p155_p2 = scmp.lt.s32.totalorder %s149_s23, %s149_s23 }
   0x8   :  { %v67_v18 = vrot.slane %v19_v15, %v66_v13  ;;  %v43_v20 = vrot.slane %v19_v15, %v42_v14  ;;  %v95_v27 = vrot.slane %v19_v15, %v94_v19 }
   0x9   :  { %p156_p3 = por %p155_p2, %p154_p1 }
   0xa   :  { %146 = vset.pattern.permute.xlu1 %v172_v5  ;;  %145 = vset.pattern.permute.xlu0 %v172_v5 }
   0xb   :  { %53 = vperm.xlu1 %146, %v16_v4   ;;  %49 = vperm.xlu0 %145, %v15_v1   ;;  %p157_p4 = pnand %p156_p3, %p150_p0 }
   0xf   :  { %57 = vperm.xlu1 %146, %v17_v0   ;;  %61 = vperm.xlu0 %145, %v18_v3  }
  0x13   :  { %147 = vset.pattern.permute.xlu1 %v173_v6  ;;  %148 = vset.pattern.permute.xlu0 %v173_v6 }
  0x14   :  { %77 = vperm.xlu1 %147, %v15_v1   ;;  %81 = vperm.xlu0 %148, %v16_v4  }
  0x18   :  { %85 = vperm.xlu1 %147, %v17_v0  }
  0x1c   :  { %89 = vperm.xlu1 %147, %v18_v3  }
  0x7d   :  { %v33_v8 = vpop.permute.xlu1 %32  ;;  %v23_v9 = vpop.permute.xlu0 %22 }
  0x7e   :  { %v44_v25 = vmul.f32 %v43_v20, %v23_v9  ;;  %v46_v36 = vmul.f32 %v43_v20, %v33_v8 }
  0x81   :  { %v38_v11 = vpop.permute.xlu1 %37  ;;  %v28_v12 = vpop.permute.xlu0 %27 }
  0x82   :  { %v45_v23 = vmul.f32 %v43_v20, %v28_v12  ;;  %v47_v45 = vmul.f32 %v43_v20, %v38_v11 }
  0x86   :  { %v54_v16 = vpop.permute.xlu1 %53  ;;  %v50_v17 = vpop.permute.xlu0 %49 }
  0x87   :  { %v69_v24 = vmul.f32 %v67_v18, %v54_v16  ;;  %v68_v26 = vmul.f32 %v67_v18, %v50_v17 }
  0x89   :  { %v73_v28 = vadd.f32 %v69_v24, %v45_v23  ;;  %v72_v31 = vadd.f32 %v68_v26, %v44_v25 }
  0x8a   :  { %v58_v21 = vpop.permute.xlu1 %57  ;;  %v62_v22 = vpop.permute.xlu0 %61 }
  0x8b   :  { %v70_v32 = vmul.f32 %v67_v18, %v58_v21  ;;  %v71_v39 = vmul.f32 %v67_v18, %v62_v22 }
  0x8d   :  { %v74_v41 = vadd.f32 %v70_v32, %v46_v36  ;;  %v75_v48 = vadd.f32 %v71_v39, %v47_v45 }
  0x8f   :  { %v78_v29 = vpop.permute.xlu1 %77  ;;  %v82_v30 = vpop.permute.xlu0 %81 }
  0x90   :  { %v96_v33 = vmul.f32 %v95_v27, %v78_v29  ;;  %v97_v34 = vmul.f32 %v95_v27, %v82_v30 }
  0x92   :  { %v100_v37 = vadd.f32 %v96_v33, %v72_v31  ;;  %v101_v38 = vadd.f32 %v97_v34, %v73_v28 }
  0x93   :  { %v86_v40 = vpop.permute.xlu1 %85 }
  0x94   :  { %v111_v42 = vadd.f32 %v136_v35, %v100_v37  ;;  %v112_v43 = vadd.f32 %v136_v35, %v101_v38  ;;  %v98_v44 = vmul.f32 %v95_v27, %v86_v40 }
  0x96   :  { %116 = vst.msk [vmem:[#allocation2] sm:$0xff] %vm115_vm0, %v111_v42  ;;  %117 = vst.msk [vmem:[#allocation2 + $0x8] sm:$0xff] %vm115_vm0, %v112_v43  ;;  %v102_v46 = vadd.f32 %v98_v44, %v74_v41 }
  0x97   :  { %v90_v47 = vpop.permute.xlu1 %89 }
  0x98   :  { %v113_v49 = vadd.f32 %v136_v35, %v102_v46  ;;  %v99_v50 = vmul.f32 %v95_v27, %v90_v47 }
  0x9a   :  { %118 = vst.msk [vmem:[#allocation2 + $0x10] sm:$0xff] %vm115_vm0, %v113_v49  ;;  %v103_v51 = vadd.f32 %v99_v50, %v75_v48 }
  0x9c   :  { %v114_v52 = vadd.f32 %v136_v35, %v103_v51 }
  0x9e   :  { %119 = vst.msk [vmem:[#allocation2 + $0x18] sm:$0xff] %vm115_vm0, %v114_v52 }
  0x9f   :  { %160 = shalt.err (!%p157_p4)
}
  0xa0   :  { %s175_s24 = smov 128   ;;  %s176_s25 = smov 8  }
  0xa1   :  { %131 = dma.vmem_to_hbm [thread:$0]  %s126_s22, 512, %s225_s3, [#allocation3], %s175_s24, %s175_s24, %s176_s25  }
  0xa2   :  { %169 = dma.done.wait [#allocation3], 512  }
  0xa3   :  { %170 = vsyncadd [#allocation3], 4294966784 }
  0xa4   :  { %135 = vsyncpa [#allocation3], 1 }

</bundles_post_ra>
